<compile_context>
chip_gen: v5e
topology: v5e:2x2
jax: 0.10.0
libtpu: 0.0.40
codegen_flags: <defaults>
</compile_context>

<pallas_src>
import jax
import jax.numpy as jnp
from jax.experimental import pallas as pl
from jax.experimental.pallas import tpu as pltpu


def _lstm_fc_kernel(xproj_ref,                     # VMEM (Tc*B, 4H) f32  pre-projected gates (+bias), chunk
                    lens_ref,                      # VMEM (B, 1)     int32 seq lengths
                    whh_ref,                       # VMEM (H, 4H)    f32  W_hh^T
                    wfc_ref,                       # VMEM (H, Cp)    f32  W_fc^T (BN folded, lane-padded)
                    bfc_ref,                       # VMEM (1, Cp)    f32  b_fc   (BN folded, lane-padded)
                    logits_ref,                    # out  (B, Cp)    f32
                    h_ref,                         # VMEM scratch (B, H) f32 (persists across chunks)
                    c_ref):                        # VMEM scratch (B, H) f32
    B = lens_ref.shape[0]
    H = whh_ref.shape[0]
    Tc = xproj_ref.shape[0] // B                   # timesteps in this chunk (static)
    chunk = pl.program_id(0)

    @pl.when(chunk == 0)
    def _():
        h_ref[...] = jnp.zeros_like(h_ref)
        c_ref[...] = jnp.zeros_like(c_ref)

    lens = lens_ref[...]                           # (B, 1) int32, hoisted
    whh = whh_ref[...]                             # (H, 4H) f32, hoisted
    t0 = chunk * Tc                                # global timestep offset of this chunk

    def step(tl, carry):
        h, c = carry                               # f32 (B, H)
        row0 = pl.multiple_of(tl * B, B)
        # Pre-projected x_t @ W_ih^T + b (from the gather table) + recurrent term.
        gates = xproj_ref[pl.ds(row0, B), :] + jnp.dot(
            h, whh, preferred_element_type=jnp.float32)       # (B, 4H) f32
        # Full-vreg EUP ops, then lane-slice (avoids 4 quarter-lane EUP pushes).
        sig = jax.nn.sigmoid(gates)
        tnh = jnp.tanh(gates)
        # Gate order matches PyTorch LSTM: [i, f, g, o].
        i_g = sig[:, 0 * H:1 * H]
        f_g = sig[:, 1 * H:2 * H]
        g_g = tnh[:, 2 * H:3 * H]
        o_g = sig[:, 3 * H:4 * H]
        c_new = f_g * c + i_g * g_g
        h_new = o_g * jnp.tanh(c_new)
        # pack_padded_sequence equivalence: freeze state once t >= seq_len[b].
        valid = (t0 + tl) < lens                   # (B, 1) bool
        return jnp.where(valid, h_new, h), jnp.where(valid, c_new, c)

    h, c = jax.lax.fori_loop(0, Tc, step, (h_ref[...], c_ref[...]),
                             unroll=min(Tc, 8))
    h_ref[...] = h
    c_ref[...] = c

    # Finalize: (BatchNorm-folded) FC on the last hidden state. Dropout = id (eval).
    @pl.when(chunk == pl.num_programs(0) - 1)
    def _():
        logits_ref[...] = (
            jnp.dot(h, wfc_ref[...], preferred_element_type=jnp.float32)
            + bfc_ref[...])


def lstm_forward_pallas(xproj, lens_b1, w_hh_t, w_fc_pad, b_fc_pad, B, time_chunk):
    TBp, G4 = xproj.shape                          # (num_chunks*Tc*B, 4H)
    H = w_hh_t.shape[0]
    Cp = w_fc_pad.shape[1]
    num_chunks = TBp // (time_chunk * B)

    grid_spec = pltpu.PrefetchScalarGridSpec(
        num_scalar_prefetch=0,
        grid=(num_chunks,),
        in_specs=[
            # xproj streamed chunk-by-chunk -> auto double-buffered DMA overlaps compute.
            pl.BlockSpec((time_chunk * B, G4), lambda i: (i, 0)),
            pl.BlockSpec((B, 1), lambda i: (0, 0)),          # seq lengths
            pl.BlockSpec((H, G4), lambda i: (0, 0)),         # W_hh^T (resident)
            pl.BlockSpec((H, Cp), lambda i: (0, 0)),         # W_fc^T (BN folded, padded)
            pl.BlockSpec((1, Cp), lambda i: (0, 0)),         # b_fc   (BN folded, padded)
        ],
        out_specs=pl.BlockSpec((B, Cp), lambda i: (0, 0)),
        scratch_shapes=[
            pltpu.VMEM((B, H), jnp.float32),                 # h carry across chunks
            pltpu.VMEM((B, H), jnp.float32),                 # c carry across chunks
        ],
    )

    return pl.pallas_call(
        _lstm_fc_kernel,
        out_shape=jax.ShapeDtypeStruct((B, Cp), jnp.float32),
        grid_spec=grid_spec,
        compiler_params=pltpu.CompilerParams(
            dimension_semantics=("arbitrary",),              # sequential over time chunks
            vmem_limit_bytes=48 * 1024 * 1024),              # explicit (v5e default is 16 MiB)
    )(xproj, lens_b1, w_hh_t, w_fc_pad, b_fc_pad)


def next_activity_lstm_forward(params, x_idx, seq_len, time_chunk=None):
    """Full forward: projection-table fold + gather (glue) + Pallas LSTM/FC kernel."""
    B, T = x_idx.shape
    H = params["w_hh_t"].shape[0]
    C = params["w_fc_t"].shape[1]

    # ---- Pad batch to a multiple of 8 sublanes (padded rows get seq_len=0 -> zero state).
    Bp = ((B + 7) // 8) * 8
    if Bp != B:
        x_idx = jnp.pad(x_idx, ((0, Bp - B), (0, 0)))
        seq_len = jnp.pad(seq_len, (0, Bp - B))

    # ---- Pre-fold embedding @ W_ih^T + (b_ih + b_hh) into a per-token gate table.
    # emb[0] == 0 (padding_idx), and padded timesteps are masked, so this is exact.
    proj = params["emb"] @ params["w_ih_t"] + params["b_gate"]        # (V+1, 4H) f32

    # ---- Time-chunking (pipelining + bounded VMEM regardless of T).
    if time_chunk is None:
        time_chunk = min(T, 64)
    num_chunks = -(-T // time_chunk)
    T_pad = num_chunks * time_chunk

    idx_tm = x_idx.T                                                  # (T, Bp) time-major
    if T_pad != T:
        idx_tm = jnp.pad(idx_tm, ((0, T_pad - T), (0, 0)))            # pad token 0, masked anyway

    # Gather of the pre-projected table -> (T_pad*Bp, 4H) f32.
    # TODO(synk): fuse this gather into the kernel (DMA row-gather from an
    # HBM-resident table) to avoid the HBM round-trip at large T*B / vocab.
    xproj = jnp.take(proj, idx_tm.reshape(-1), axis=0).astype(jnp.float32)

    lens_b1 = seq_len.astype(jnp.int32)[:, None]                      # (Bp, 1)

    # ---- Fold eval-mode BatchNorm1d into the FC (exact):
    #   y = (h - mean) * gamma / sqrt(var+eps) + beta ; logits = y @ Wfc^T + b
    eps = jnp.float32(1e-5)
    s = params["bn_gamma"] * jax.lax.rsqrt(params["bn_var"] + eps)    # (H,)
    w_fc_eff = params["w_fc_t"] * s[:, None]                          # (H, C)
    b_fc_eff = params["b_fc"] + (params["bn_beta"]
                                 - params["bn_mean"] * s) @ params["w_fc_t"]

    # Lane-dense output: pad C up to a multiple of 128.
    Cp = ((C + 127) // 128) * 128
    w_fc_pad = jnp.zeros((H, Cp), jnp.float32).at[:, :C].set(w_fc_eff)
    b_fc_pad = jnp.zeros((1, Cp), jnp.float32).at[0, :C].set(b_fc_eff)

    logits_pad = lstm_forward_pallas(
        xproj, lens_b1,
        params["w_hh_t"].astype(jnp.float32),
        w_fc_pad, b_fc_pad, Bp, time_chunk)
    return logits_pad[:B, :C]


def reference_forward(params, x_idx, seq_len):
    """Pure-JAX f32 reference of the same math (for verification)."""
    B, T = x_idx.shape
    H = params["w_hh_t"].shape[0]
    x_emb = jnp.take(params["emb"], x_idx, axis=0)
    h = jnp.zeros((B, H), jnp.float32)
    c = jnp.zeros((B, H), jnp.float32)
    for t in range(T):
        xt = x_emb[:, t, :]
        gates = xt @ params["w_ih_t"] + h @ params["w_hh_t"] + params["b_gate"]
        i_g = jax.nn.sigmoid(gates[:, 0 * H:1 * H])
        f_g = jax.nn.sigmoid(gates[:, 1 * H:2 * H])
        g_g = jnp.tanh(gates[:, 2 * H:3 * H])
        o_g = jax.nn.sigmoid(gates[:, 3 * H:4 * H])
        c_new = f_g * c + i_g * g_g
        h_new = o_g * jnp.tanh(c_new)
        valid = (t < seq_len)[:, None]
        h = jnp.where(valid, h_new, h)
        c = jnp.where(valid, c_new, c)
    inv_std = jax.lax.rsqrt(params["bn_var"] + 1e-5)
    normed = (h - params["bn_mean"]) * inv_std * params["bn_gamma"] + params["bn_beta"]
    return normed @ params["w_fc_t"] + params["b_fc"]


def init_params(key, num_cls, emb_dim, hidden_dim):
    ks = jax.random.split(key, 8)
    scale = 0.1
    emb = scale * jax.random.normal(ks[0], (num_cls + 1, emb_dim), jnp.float32)
    emb = emb.at[0].set(0.0)  # padding_idx=0
    w_ih = scale * jax.random.normal(ks[1], (4 * hidden_dim, emb_dim), jnp.float32)
    w_hh = scale * jax.random.normal(ks[2], (4 * hidden_dim, hidden_dim), jnp.float32)
    b_ih = scale * jax.random.normal(ks[3], (4 * hidden_dim,), jnp.float32)
    b_hh = scale * jax.random.normal(ks[4], (4 * hidden_dim,), jnp.float32)
    bn_gamma = 1.0 + scale * jax.random.normal(ks[5], (hidden_dim,), jnp.float32)
    bn_beta = scale * jax.random.normal(ks[6], (hidden_dim,), jnp.float32)
    w_fc = scale * jax.random.normal(ks[7], (num_cls, hidden_dim), jnp.float32)
    b_fc = jnp.zeros((num_cls,), jnp.float32)
    return {
        "emb": emb,
        "w_ih_t": w_ih.T,                          # (E, 4H)
        "w_hh_t": w_hh.T,                          # (H, 4H)
        "b_gate": (b_ih + b_hh)[None, :],          # (1, 4H)
        "bn_gamma": bn_gamma,                      # (H,)
        "bn_beta": bn_beta,                        # (H,)
        "bn_mean": jnp.zeros((hidden_dim,), jnp.float32),   # running_mean
        "bn_var": jnp.ones((hidden_dim,), jnp.float32),     # running_var
        "w_fc_t": w_fc.T,                          # (H, C)
        "b_fc": b_fc,                              # (C,)
    }


if __name__ == "__main__":
    num_cls = 10
    emb_dim = 32
    hidden_dim = 32
    B, T = 8, 8

    key = jax.random.PRNGKey(0)
    k_par, k_len, k_tok = jax.random.split(key, 3)

    params = init_params(k_par, num_cls, emb_dim, hidden_dim)

    # NOTE: assumes seq_len >= 1 for every real row (PyTorch would error on 0).
    seq_len = jax.random.randint(k_len, (B,), 1, T + 1, dtype=jnp.int32)   # (B,)
    tokens = jax.random.randint(k_tok, (B, T), 1, num_cls + 1, dtype=jnp.int32)
    pos = jnp.arange(T)[None, :]
    x_idx = jnp.where(pos < seq_len[:, None], tokens, 0)                    # (B, T)

    logits = next_activity_lstm_forward(params, x_idx, seq_len)
    logits = jax.block_until_ready(logits)

    ref = reference_forward(params, x_idx, seq_len)
    assert logits.shape == (B, num_cls)
    # f32 recurrence + f32 matmuls -> tight tolerance.
    assert jnp.allclose(logits, ref, rtol=1e-3, atol=1e-3), (
        f"max abs err {jnp.max(jnp.abs(logits - ref))}")

    print("KERNEL_OK")
</pallas_src>

<mosaic_0001>
module attributes {stable_mosaic.version = 11 : i64} {
  func.func @_lstm_fc_kernel(%arg0: i32, %arg1: memref<64x128xf32, #tpu.memory_space<vmem>>, %arg2: memref<8x1xi32, #tpu.memory_space<vmem>>, %arg3: memref<32x128xf32, #tpu.memory_space<vmem>>, %arg4: memref<32x128xf32, #tpu.memory_space<vmem>>, %arg5: memref<1x128xf32, #tpu.memory_space<vmem>>, %arg6: memref<8x128xf32, #tpu.memory_space<vmem>>, %arg7: memref<8x32xf32, #tpu.memory_space<vmem>>, %arg8: memref<8x32xf32, #tpu.memory_space<vmem>>) attributes {dimension_semantics = [#tpu.dimension_semantics<arbitrary>], iteration_bounds = array<i64: 1>, scalar_prefetch = 0 : i64, scratch_operands = 2 : i64, tpu.core_type = #tpu.core_type<tc>, window_params = [{transform_indices = @transform_0, window_bounds = array<i64: 64, 128>}, {pipeline_mode = #tpu.pipeline_mode<synchronous>, transform_indices = @transform_1, window_bounds = array<i64: 8, 1>}, {pipeline_mode = #tpu.pipeline_mode<synchronous>, transform_indices = @transform_2, window_bounds = array<i64: 32, 128>}, {pipeline_mode = #tpu.pipeline_mode<synchronous>, transform_indices = @transform_3, window_bounds = array<i64: 32, 128>}, {pipeline_mode = #tpu.pipeline_mode<synchronous>, transform_indices = @transform_4, window_bounds = array<i64: 1, 128>}, {pipeline_mode = #tpu.pipeline_mode<synchronous>, transform_indices = @transform_5, window_bounds = array<i64: 8, 128>}]} {
    %c0_i32 = arith.constant 0 : i32
    %0 = arith.cmpi eq, %arg0, %c0_i32 : i32
    %1 = arith.extui %0 : i1 to i32
    %c0_i32_0 = arith.constant 0 : i32
    %2 = arith.cmpi ne, %1, %c0_i32_0 : i32
    scf.if %2 {
      %cst_47 = arith.constant 0.000000e+00 : f32
      %253 = vector.broadcast %cst_47 : f32 to vector<8x32xf32>
      %c0_48 = arith.constant 0 : index
      %c0_49 = arith.constant 0 : index
      %254 = vector.load %arg7[%c0_48, %c0_49] : memref<8x32xf32, #tpu.memory_space<vmem>>, vector<8x32xf32>
      tpu.vector_store %arg7[%c0_48, %c0_49], %253 {strides = array<i32>} : memref<8x32xf32, #tpu.memory_space<vmem>>, vector<8x32xf32>,
      %cst_50 = arith.constant 0.000000e+00 : f32
      %255 = vector.broadcast %cst_50 : f32 to vector<8x32xf32>
      %c0_51 = arith.constant 0 : index
      %c0_52 = arith.constant 0 : index
      %256 = vector.load %arg8[%c0_51, %c0_52] : memref<8x32xf32, #tpu.memory_space<vmem>>, vector<8x32xf32>
      tpu.vector_store %arg8[%c0_51, %c0_52], %255 {strides = array<i32>} : memref<8x32xf32, #tpu.memory_space<vmem>>, vector<8x32xf32>,
    } else {
    }
    %c0 = arith.constant 0 : index
    %c0_1 = arith.constant 0 : index
    %3 = vector.load %arg2[%c0, %c0_1] : memref<8x1xi32, #tpu.memory_space<vmem>>, vector<8x1xi32>
    %c0_2 = arith.constant 0 : index
    %c0_3 = arith.constant 0 : index
    %4 = vector.load %arg3[%c0_2, %c0_3] : memref<32x128xf32, #tpu.memory_space<vmem>>, vector<32x128xf32>
    %c8_i32 = arith.constant 8 : i32
    %5 = arith.muli %arg0, %c8_i32 : i32
    %c0_4 = arith.constant 0 : index
    %c0_5 = arith.constant 0 : index
    %6 = vector.load %arg7[%c0_4, %c0_5] : memref<8x32xf32, #tpu.memory_space<vmem>>, vector<8x32xf32>
    %c0_6 = arith.constant 0 : index
    %c0_7 = arith.constant 0 : index
    %7 = vector.load %arg8[%c0_6, %c0_7] : memref<8x32xf32, #tpu.memory_space<vmem>>, vector<8x32xf32>
    %c0_i32_8 = arith.constant 0 : i32
    %c8_i32_9 = arith.constant 8 : i32
    %8 = arith.muli %c0_i32_8, %c8_i32_9 : i32
    %9 = tpu.assume_multiple %8, 8 : i32
    %10 = arith.index_cast %9 : i32 to index
    %c0_10 = arith.constant 0 : index
    %11 = vector.load %arg1[%10, %c0_10] : memref<64x128xf32, #tpu.memory_space<vmem>>, vector<8x128xf32>
    %cst = arith.constant dense<0.000000e+00> : vector<8x128xf32>
    %12 = tpu.matmul %6, %4, %cst {dimension_numbers = #tpu.dot_dimension_numbers<[1], [0], [0], [1], [0, 0, 1, 1], [], []>} : vector<8x32xf32>, vector<32x128xf32>, vector<8x128xf32> -> vector<8x128xf32>
    %13 = arith.addf %11, %12 : vector<8x128xf32>
    %14 = arith.negf %13 : vector<8x128xf32>
    %15 = math.exp %14 : vector<8x128xf32>
    %cst_11 = arith.constant 1.000000e+00 : f32
    %16 = vector.broadcast %cst_11 : f32 to vector<8x128xf32>
    %17 = arith.addf %16, %15 : vector<8x128xf32>
    %18 = arith.divf %16, %17 : vector<8x128xf32>
    %19 = math.tanh %13 : vector<8x128xf32>
    %20 = vector.extract_strided_slice %18 {offsets = [0, 0], sizes = [8, 32], strides = [1, 1]} : vector<8x128xf32> to vector<8x32xf32>
    %21 = vector.extract_strided_slice %18 {offsets = [0, 32], sizes = [8, 32], strides = [1, 1]} : vector<8x128xf32> to vector<8x32xf32>
    %22 = vector.extract_strided_slice %19 {offsets = [0, 64], sizes = [8, 32], strides = [1, 1]} : vector<8x128xf32> to vector<8x32xf32>
    %23 = vector.extract_strided_slice %18 {offsets = [0, 96], sizes = [8, 32], strides = [1, 1]} : vector<8x128xf32> to vector<8x32xf32>
    %24 = arith.mulf %21, %7 : vector<8x32xf32>
    %25 = arith.mulf %20, %22 : vector<8x32xf32>
    %26 = arith.addf %24, %25 : vector<8x32xf32>
    %27 = math.tanh %26 : vector<8x32xf32>
    %28 = arith.mulf %23, %27 : vector<8x32xf32>
    %29 = arith.addi %5, %c0_i32_8 : i32
    %30 = vector.broadcast %29 : i32 to vector<8x1xi32>
    %31 = arith.cmpi slt, %30, %3 : vector<8x1xi32>
    %32 = vector.shape_cast %31 : vector<8x1xi1> to vector<8x1xi1>
    %33 = vector.broadcast %32 : vector<8x1xi1> to vector<8x32xi1>
    %34 = arith.select %33, %28, %6 : vector<8x32xi1>, vector<8x32xf32>
    %35 = vector.shape_cast %31 : vector<8x1xi1> to vector<8x1xi1>
    %36 = vector.broadcast %35 : vector<8x1xi1> to vector<8x32xi1>
    %37 = arith.select %36, %26, %7 : vector<8x32xi1>, vector<8x32xf32>
    %c1_i32 = arith.constant 1 : i32
    %c8_i32_12 = arith.constant 8 : i32
    %38 = arith.muli %c1_i32, %c8_i32_12 : i32
    %39 = tpu.assume_multiple %38, 8 : i32
    %40 = arith.index_cast %39 : i32 to index
    %c0_13 = arith.constant 0 : index
    %41 = vector.load %arg1[%40, %c0_13] : memref<64x128xf32, #tpu.memory_space<vmem>>, vector<8x128xf32>
    %cst_14 = arith.constant dense<0.000000e+00> : vector<8x128xf32>
    %42 = tpu.matmul %34, %4, %cst_14 {dimension_numbers = #tpu.dot_dimension_numbers<[1], [0], [0], [1], [0, 0, 1, 1], [], []>} : vector<8x32xf32>, vector<32x128xf32>, vector<8x128xf32> -> vector<8x128xf32>
    %43 = arith.addf %41, %42 : vector<8x128xf32>
    %44 = arith.negf %43 : vector<8x128xf32>
    %45 = math.exp %44 : vector<8x128xf32>
    %cst_15 = arith.constant 1.000000e+00 : f32
    %46 = vector.broadcast %cst_15 : f32 to vector<8x128xf32>
    %47 = arith.addf %46, %45 : vector<8x128xf32>
    %48 = arith.divf %46, %47 : vector<8x128xf32>
    %49 = math.tanh %43 : vector<8x128xf32>
    %50 = vector.extract_strided_slice %48 {offsets = [0, 0], sizes = [8, 32], strides = [1, 1]} : vector<8x128xf32> to vector<8x32xf32>
    %51 = vector.extract_strided_slice %48 {offsets = [0, 32], sizes = [8, 32], strides = [1, 1]} : vector<8x128xf32> to vector<8x32xf32>
    %52 = vector.extract_strided_slice %49 {offsets = [0, 64], sizes = [8, 32], strides = [1, 1]} : vector<8x128xf32> to vector<8x32xf32>
    %53 = vector.extract_strided_slice %48 {offsets = [0, 96], sizes = [8, 32], strides = [1, 1]} : vector<8x128xf32> to vector<8x32xf32>
    %54 = arith.mulf %51, %37 : vector<8x32xf32>
    %55 = arith.mulf %50, %52 : vector<8x32xf32>
    %56 = arith.addf %54, %55 : vector<8x32xf32>
    %57 = math.tanh %56 : vector<8x32xf32>
    %58 = arith.mulf %53, %57 : vector<8x32xf32>
    %59 = arith.addi %5, %c1_i32 : i32
    %60 = vector.broadcast %59 : i32 to vector<8x1xi32>
    %61 = arith.cmpi slt, %60, %3 : vector<8x1xi32>
    %62 = vector.shape_cast %61 : vector<8x1xi1> to vector<8x1xi1>
    %63 = vector.broadcast %62 : vector<8x1xi1> to vector<8x32xi1>
    %64 = arith.select %63, %58, %34 : vector<8x32xi1>, vector<8x32xf32>
    %65 = vector.shape_cast %61 : vector<8x1xi1> to vector<8x1xi1>
    %66 = vector.broadcast %65 : vector<8x1xi1> to vector<8x32xi1>
    %67 = arith.select %66, %56, %37 : vector<8x32xi1>, vector<8x32xf32>
    %c2_i32 = arith.constant 2 : i32
    %c8_i32_16 = arith.constant 8 : i32
    %68 = arith.muli %c2_i32, %c8_i32_16 : i32
    %69 = tpu.assume_multiple %68, 8 : i32
    %70 = arith.index_cast %69 : i32 to index
    %c0_17 = arith.constant 0 : index
    %71 = vector.load %arg1[%70, %c0_17] : memref<64x128xf32, #tpu.memory_space<vmem>>, vector<8x128xf32>
    %cst_18 = arith.constant dense<0.000000e+00> : vector<8x128xf32>
    %72 = tpu.matmul %64, %4, %cst_18 {dimension_numbers = #tpu.dot_dimension_numbers<[1], [0], [0], [1], [0, 0, 1, 1], [], []>} : vector<8x32xf32>, vector<32x128xf32>, vector<8x128xf32> -> vector<8x128xf32>
    %73 = arith.addf %71, %72 : vector<8x128xf32>
    %74 = arith.negf %73 : vector<8x128xf32>
    %75 = math.exp %74 : vector<8x128xf32>
    %cst_19 = arith.constant 1.000000e+00 : f32
    %76 = vector.broadcast %cst_19 : f32 to vector<8x128xf32>
    %77 = arith.addf %76, %75 : vector<8x128xf32>
    %78 = arith.divf %76, %77 : vector<8x128xf32>
    %79 = math.tanh %73 : vector<8x128xf32>
    %80 = vector.extract_strided_slice %78 {offsets = [0, 0], sizes = [8, 32], strides = [1, 1]} : vector<8x128xf32> to vector<8x32xf32>
    %81 = vector.extract_strided_slice %78 {offsets = [0, 32], sizes = [8, 32], strides = [1, 1]} : vector<8x128xf32> to vector<8x32xf32>
    %82 = vector.extract_strided_slice %79 {offsets = [0, 64], sizes = [8, 32], strides = [1, 1]} : vector<8x128xf32> to vector<8x32xf32>
    %83 = vector.extract_strided_slice %78 {offsets = [0, 96], sizes = [8, 32], strides = [1, 1]} : vector<8x128xf32> to vector<8x32xf32>
    %84 = arith.mulf %81, %67 : vector<8x32xf32>
    %85 = arith.mulf %80, %82 : vector<8x32xf32>
    %86 = arith.addf %84, %85 : vector<8x32xf32>
    %87 = math.tanh %86 : vector<8x32xf32>
    %88 = arith.mulf %83, %87 : vector<8x32xf32>
    %89 = arith.addi %5, %c2_i32 : i32
    %90 = vector.broadcast %89 : i32 to vector<8x1xi32>
    %91 = arith.cmpi slt, %90, %3 : vector<8x1xi32>
    %92 = vector.shape_cast %91 : vector<8x1xi1> to vector<8x1xi1>
    %93 = vector.broadcast %92 : vector<8x1xi1> to vector<8x32xi1>
    %94 = arith.select %93, %88, %64 : vector<8x32xi1>, vector<8x32xf32>
    %95 = vector.shape_cast %91 : vector<8x1xi1> to vector<8x1xi1>
    %96 = vector.broadcast %95 : vector<8x1xi1> to vector<8x32xi1>
    %97 = arith.select %96, %86, %67 : vector<8x32xi1>, vector<8x32xf32>
    %c3_i32 = arith.constant 3 : i32
    %c8_i32_20 = arith.constant 8 : i32
    %98 = arith.muli %c3_i32, %c8_i32_20 : i32
    %99 = tpu.assume_multiple %98, 8 : i32
    %100 = arith.index_cast %99 : i32 to index
    %c0_21 = arith.constant 0 : index
    %101 = vector.load %arg1[%100, %c0_21] : memref<64x128xf32, #tpu.memory_space<vmem>>, vector<8x128xf32>
    %cst_22 = arith.constant dense<0.000000e+00> : vector<8x128xf32>
    %102 = tpu.matmul %94, %4, %cst_22 {dimension_numbers = #tpu.dot_dimension_numbers<[1], [0], [0], [1], [0, 0, 1, 1], [], []>} : vector<8x32xf32>, vector<32x128xf32>, vector<8x128xf32> -> vector<8x128xf32>
    %103 = arith.addf %101, %102 : vector<8x128xf32>
    %104 = arith.negf %103 : vector<8x128xf32>
    %105 = math.exp %104 : vector<8x128xf32>
    %cst_23 = arith.constant 1.000000e+00 : f32
    %106 = vector.broadcast %cst_23 : f32 to vector<8x128xf32>
    %107 = arith.addf %106, %105 : vector<8x128xf32>
    %108 = arith.divf %106, %107 : vector<8x128xf32>
    %109 = math.tanh %103 : vector<8x128xf32>
    %110 = vector.extract_strided_slice %108 {offsets = [0, 0], sizes = [8, 32], strides = [1, 1]} : vector<8x128xf32> to vector<8x32xf32>
    %111 = vector.extract_strided_slice %108 {offsets = [0, 32], sizes = [8, 32], strides = [1, 1]} : vector<8x128xf32> to vector<8x32xf32>
    %112 = vector.extract_strided_slice %109 {offsets = [0, 64], sizes = [8, 32], strides = [1, 1]} : vector<8x128xf32> to vector<8x32xf32>
    %113 = vector.extract_strided_slice %108 {offsets = [0, 96], sizes = [8, 32], strides = [1, 1]} : vector<8x128xf32> to vector<8x32xf32>
    %114 = arith.mulf %111, %97 : vector<8x32xf32>
    %115 = arith.mulf %110, %112 : vector<8x32xf32>
    %116 = arith.addf %114, %115 : vector<8x32xf32>
    %117 = math.tanh %116 : vector<8x32xf32>
    %118 = arith.mulf %113, %117 : vector<8x32xf32>
    %119 = arith.addi %5, %c3_i32 : i32
    %120 = vector.broadcast %119 : i32 to vector<8x1xi32>
    %121 = arith.cmpi slt, %120, %3 : vector<8x1xi32>
    %122 = vector.shape_cast %121 : vector<8x1xi1> to vector<8x1xi1>
    %123 = vector.broadcast %122 : vector<8x1xi1> to vector<8x32xi1>
    %124 = arith.select %123, %118, %94 : vector<8x32xi1>, vector<8x32xf32>
    %125 = vector.shape_cast %121 : vector<8x1xi1> to vector<8x1xi1>
    %126 = vector.broadcast %125 : vector<8x1xi1> to vector<8x32xi1>
    %127 = arith.select %126, %116, %97 : vector<8x32xi1>, vector<8x32xf32>
    %c4_i32 = arith.constant 4 : i32
    %c8_i32_24 = arith.constant 8 : i32
    %128 = arith.muli %c4_i32, %c8_i32_24 : i32
    %129 = tpu.assume_multiple %128, 8 : i32
    %130 = arith.index_cast %129 : i32 to index
    %c0_25 = arith.constant 0 : index
    %131 = vector.load %arg1[%130, %c0_25] : memref<64x128xf32, #tpu.memory_space<vmem>>, vector<8x128xf32>
    %cst_26 = arith.constant dense<0.000000e+00> : vector<8x128xf32>
    %132 = tpu.matmul %124, %4, %cst_26 {dimension_numbers = #tpu.dot_dimension_numbers<[1], [0], [0], [1], [0, 0, 1, 1], [], []>} : vector<8x32xf32>, vector<32x128xf32>, vector<8x128xf32> -> vector<8x128xf32>
    %133 = arith.addf %131, %132 : vector<8x128xf32>
    %134 = arith.negf %133 : vector<8x128xf32>
    %135 = math.exp %134 : vector<8x128xf32>
    %cst_27 = arith.constant 1.000000e+00 : f32
    %136 = vector.broadcast %cst_27 : f32 to vector<8x128xf32>
    %137 = arith.addf %136, %135 : vector<8x128xf32>
    %138 = arith.divf %136, %137 : vector<8x128xf32>
    %139 = math.tanh %133 : vector<8x128xf32>
    %140 = vector.extract_strided_slice %138 {offsets = [0, 0], sizes = [8, 32], strides = [1, 1]} : vector<8x128xf32> to vector<8x32xf32>
    %141 = vector.extract_strided_slice %138 {offsets = [0, 32], sizes = [8, 32], strides = [1, 1]} : vector<8x128xf32> to vector<8x32xf32>
    %142 = vector.extract_strided_slice %139 {offsets = [0, 64], sizes = [8, 32], strides = [1, 1]} : vector<8x128xf32> to vector<8x32xf32>
    %143 = vector.extract_strided_slice %138 {offsets = [0, 96], sizes = [8, 32], strides = [1, 1]} : vector<8x128xf32> to vector<8x32xf32>
    %144 = arith.mulf %141, %127 : vector<8x32xf32>
    %145 = arith.mulf %140, %142 : vector<8x32xf32>
    %146 = arith.addf %144, %145 : vector<8x32xf32>
    %147 = math.tanh %146 : vector<8x32xf32>
    %148 = arith.mulf %143, %147 : vector<8x32xf32>
    %149 = arith.addi %5, %c4_i32 : i32
    %150 = vector.broadcast %149 : i32 to vector<8x1xi32>
    %151 = arith.cmpi slt, %150, %3 : vector<8x1xi32>
    %152 = vector.shape_cast %151 : vector<8x1xi1> to vector<8x1xi1>
    %153 = vector.broadcast %152 : vector<8x1xi1> to vector<8x32xi1>
    %154 = arith.select %153, %148, %124 : vector<8x32xi1>, vector<8x32xf32>
    %155 = vector.shape_cast %151 : vector<8x1xi1> to vector<8x1xi1>
    %156 = vector.broadcast %155 : vector<8x1xi1> to vector<8x32xi1>
    %157 = arith.select %156, %146, %127 : vector<8x32xi1>, vector<8x32xf32>
    %c5_i32 = arith.constant 5 : i32
    %c8_i32_28 = arith.constant 8 : i32
    %158 = arith.muli %c5_i32, %c8_i32_28 : i32
    %159 = tpu.assume_multiple %158, 8 : i32
    %160 = arith.index_cast %159 : i32 to index
    %c0_29 = arith.constant 0 : index
    %161 = vector.load %arg1[%160, %c0_29] : memref<64x128xf32, #tpu.memory_space<vmem>>, vector<8x128xf32>
    %cst_30 = arith.constant dense<0.000000e+00> : vector<8x128xf32>
    %162 = tpu.matmul %154, %4, %cst_30 {dimension_numbers = #tpu.dot_dimension_numbers<[1], [0], [0], [1], [0, 0, 1, 1], [], []>} : vector<8x32xf32>, vector<32x128xf32>, vector<8x128xf32> -> vector<8x128xf32>
    %163 = arith.addf %161, %162 : vector<8x128xf32>
    %164 = arith.negf %163 : vector<8x128xf32>
    %165 = math.exp %164 : vector<8x128xf32>
    %cst_31 = arith.constant 1.000000e+00 : f32
    %166 = vector.broadcast %cst_31 : f32 to vector<8x128xf32>
    %167 = arith.addf %166, %165 : vector<8x128xf32>
    %168 = arith.divf %166, %167 : vector<8x128xf32>
    %169 = math.tanh %163 : vector<8x128xf32>
    %170 = vector.extract_strided_slice %168 {offsets = [0, 0], sizes = [8, 32], strides = [1, 1]} : vector<8x128xf32> to vector<8x32xf32>
    %171 = vector.extract_strided_slice %168 {offsets = [0, 32], sizes = [8, 32], strides = [1, 1]} : vector<8x128xf32> to vector<8x32xf32>
    %172 = vector.extract_strided_slice %169 {offsets = [0, 64], sizes = [8, 32], strides = [1, 1]} : vector<8x128xf32> to vector<8x32xf32>
    %173 = vector.extract_strided_slice %168 {offsets = [0, 96], sizes = [8, 32], strides = [1, 1]} : vector<8x128xf32> to vector<8x32xf32>
    %174 = arith.mulf %171, %157 : vector<8x32xf32>
    %175 = arith.mulf %170, %172 : vector<8x32xf32>
    %176 = arith.addf %174, %175 : vector<8x32xf32>
    %177 = math.tanh %176 : vector<8x32xf32>
    %178 = arith.mulf %173, %177 : vector<8x32xf32>
    %179 = arith.addi %5, %c5_i32 : i32
    %180 = vector.broadcast %179 : i32 to vector<8x1xi32>
    %181 = arith.cmpi slt, %180, %3 : vector<8x1xi32>
    %182 = vector.shape_cast %181 : vector<8x1xi1> to vector<8x1xi1>
    %183 = vector.broadcast %182 : vector<8x1xi1> to vector<8x32xi1>
    %184 = arith.select %183, %178, %154 : vector<8x32xi1>, vector<8x32xf32>
    %185 = vector.shape_cast %181 : vector<8x1xi1> to vector<8x1xi1>
    %186 = vector.broadcast %185 : vector<8x1xi1> to vector<8x32xi1>
    %187 = arith.select %186, %176, %157 : vector<8x32xi1>, vector<8x32xf32>
    %c6_i32 = arith.constant 6 : i32
    %c8_i32_32 = arith.constant 8 : i32
    %188 = arith.muli %c6_i32, %c8_i32_32 : i32
    %189 = tpu.assume_multiple %188, 8 : i32
    %190 = arith.index_cast %189 : i32 to index
    %c0_33 = arith.constant 0 : index
    %191 = vector.load %arg1[%190, %c0_33] : memref<64x128xf32, #tpu.memory_space<vmem>>, vector<8x128xf32>
    %cst_34 = arith.constant dense<0.000000e+00> : vector<8x128xf32>
    %192 = tpu.matmul %184, %4, %cst_34 {dimension_numbers = #tpu.dot_dimension_numbers<[1], [0], [0], [1], [0, 0, 1, 1], [], []>} : vector<8x32xf32>, vector<32x128xf32>, vector<8x128xf32> -> vector<8x128xf32>
    %193 = arith.addf %191, %192 : vector<8x128xf32>
    %194 = arith.negf %193 : vector<8x128xf32>
    %195 = math.exp %194 : vector<8x128xf32>
    %cst_35 = arith.constant 1.000000e+00 : f32
    %196 = vector.broadcast %cst_35 : f32 to vector<8x128xf32>
    %197 = arith.addf %196, %195 : vector<8x128xf32>
    %198 = arith.divf %196, %197 : vector<8x128xf32>
    %199 = math.tanh %193 : vector<8x128xf32>
    %200 = vector.extract_strided_slice %198 {offsets = [0, 0], sizes = [8, 32], strides = [1, 1]} : vector<8x128xf32> to vector<8x32xf32>
    %201 = vector.extract_strided_slice %198 {offsets = [0, 32], sizes = [8, 32], strides = [1, 1]} : vector<8x128xf32> to vector<8x32xf32>
    %202 = vector.extract_strided_slice %199 {offsets = [0, 64], sizes = [8, 32], strides = [1, 1]} : vector<8x128xf32> to vector<8x32xf32>
    %203 = vector.extract_strided_slice %198 {offsets = [0, 96], sizes = [8, 32], strides = [1, 1]} : vector<8x128xf32> to vector<8x32xf32>
    %204 = arith.mulf %201, %187 : vector<8x32xf32>
    %205 = arith.mulf %200, %202 : vector<8x32xf32>
    %206 = arith.addf %204, %205 : vector<8x32xf32>
    %207 = math.tanh %206 : vector<8x32xf32>
    %208 = arith.mulf %203, %207 : vector<8x32xf32>
    %209 = arith.addi %5, %c6_i32 : i32
    %210 = vector.broadcast %209 : i32 to vector<8x1xi32>
    %211 = arith.cmpi slt, %210, %3 : vector<8x1xi32>
    %212 = vector.shape_cast %211 : vector<8x1xi1> to vector<8x1xi1>
    %213 = vector.broadcast %212 : vector<8x1xi1> to vector<8x32xi1>
    %214 = arith.select %213, %208, %184 : vector<8x32xi1>, vector<8x32xf32>
    %215 = vector.shape_cast %211 : vector<8x1xi1> to vector<8x1xi1>
    %216 = vector.broadcast %215 : vector<8x1xi1> to vector<8x32xi1>
    %217 = arith.select %216, %206, %187 : vector<8x32xi1>, vector<8x32xf32>
    %c7_i32 = arith.constant 7 : i32
    %c8_i32_36 = arith.constant 8 : i32
    %218 = arith.muli %c7_i32, %c8_i32_36 : i32
    %219 = tpu.assume_multiple %218, 8 : i32
    %220 = arith.index_cast %219 : i32 to index
    %c0_37 = arith.constant 0 : index
    %221 = vector.load %arg1[%220, %c0_37] : memref<64x128xf32, #tpu.memory_space<vmem>>, vector<8x128xf32>
    %cst_38 = arith.constant dense<0.000000e+00> : vector<8x128xf32>
    %222 = tpu.matmul %214, %4, %cst_38 {dimension_numbers = #tpu.dot_dimension_numbers<[1], [0], [0], [1], [0, 0, 1, 1], [], []>} : vector<8x32xf32>, vector<32x128xf32>, vector<8x128xf32> -> vector<8x128xf32>
    %223 = arith.addf %221, %222 : vector<8x128xf32>
    %224 = arith.negf %223 : vector<8x128xf32>
    %225 = math.exp %224 : vector<8x128xf32>
    %cst_39 = arith.constant 1.000000e+00 : f32
    %226 = vector.broadcast %cst_39 : f32 to vector<8x128xf32>
    %227 = arith.addf %226, %225 : vector<8x128xf32>
    %228 = arith.divf %226, %227 : vector<8x128xf32>
    %229 = math.tanh %223 : vector<8x128xf32>
    %230 = vector.extract_strided_slice %228 {offsets = [0, 0], sizes = [8, 32], strides = [1, 1]} : vector<8x128xf32> to vector<8x32xf32>
    %231 = vector.extract_strided_slice %228 {offsets = [0, 32], sizes = [8, 32], strides = [1, 1]} : vector<8x128xf32> to vector<8x32xf32>
    %232 = vector.extract_strided_slice %229 {offsets = [0, 64], sizes = [8, 32], strides = [1, 1]} : vector<8x128xf32> to vector<8x32xf32>
    %233 = vector.extract_strided_slice %228 {offsets = [0, 96], sizes = [8, 32], strides = [1, 1]} : vector<8x128xf32> to vector<8x32xf32>
    %234 = arith.mulf %231, %217 : vector<8x32xf32>
    %235 = arith.mulf %230, %232 : vector<8x32xf32>
    %236 = arith.addf %234, %235 : vector<8x32xf32>
    %237 = math.tanh %236 : vector<8x32xf32>
    %238 = arith.mulf %233, %237 : vector<8x32xf32>
    %239 = arith.addi %5, %c7_i32 : i32
    %240 = vector.broadcast %239 : i32 to vector<8x1xi32>
    %241 = arith.cmpi slt, %240, %3 : vector<8x1xi32>
    %242 = vector.shape_cast %241 : vector<8x1xi1> to vector<8x1xi1>
    %243 = vector.broadcast %242 : vector<8x1xi1> to vector<8x32xi1>
    %244 = arith.select %243, %238, %214 : vector<8x32xi1>, vector<8x32xf32>
    %245 = vector.shape_cast %241 : vector<8x1xi1> to vector<8x1xi1>
    %246 = vector.broadcast %245 : vector<8x1xi1> to vector<8x32xi1>
    %247 = arith.select %246, %236, %217 : vector<8x32xi1>, vector<8x32xf32>
    %c8_i32_40 = arith.constant 8 : i32
    %c0_41 = arith.constant 0 : index
    %c0_42 = arith.constant 0 : index
    %248 = vector.load %arg7[%c0_41, %c0_42] : memref<8x32xf32, #tpu.memory_space<vmem>>, vector<8x32xf32>
    tpu.vector_store %arg7[%c0_41, %c0_42], %244 {strides = array<i32>} : memref<8x32xf32, #tpu.memory_space<vmem>>, vector<8x32xf32>,
    %c0_43 = arith.constant 0 : index
    %c0_44 = arith.constant 0 : index
    %249 = vector.load %arg8[%c0_43, %c0_44] : memref<8x32xf32, #tpu.memory_space<vmem>>, vector<8x32xf32>
    tpu.vector_store %arg8[%c0_43, %c0_44], %247 {strides = array<i32>} : memref<8x32xf32, #tpu.memory_space<vmem>>, vector<8x32xf32>,
    %c0_i32_45 = arith.constant 0 : i32
    %250 = arith.cmpi eq, %arg0, %c0_i32_45 : i32
    %251 = arith.extui %250 : i1 to i32
    %c0_i32_46 = arith.constant 0 : i32
    %252 = arith.cmpi ne, %251, %c0_i32_46 : i32
    scf.if %252 {
      %c0_47 = arith.constant 0 : index
      %c0_48 = arith.constant 0 : index
      %253 = vector.load %arg4[%c0_47, %c0_48] : memref<32x128xf32, #tpu.memory_space<vmem>>, vector<32x128xf32>
      %cst_49 = arith.constant dense<0.000000e+00> : vector<8x128xf32>
      %254 = tpu.matmul %244, %253, %cst_49 {dimension_numbers = #tpu.dot_dimension_numbers<[1], [0], [0], [1], [0, 0, 1, 1], [], []>} : vector<8x32xf32>, vector<32x128xf32>, vector<8x128xf32> -> vector<8x128xf32>
      %c0_50 = arith.constant 0 : index
      %c0_51 = arith.constant 0 : index
      %255 = vector.load %arg5[%c0_50, %c0_51] : memref<1x128xf32, #tpu.memory_space<vmem>>, vector<1x128xf32>
      %256 = vector.broadcast %255 : vector<1x128xf32> to vector<8x128xf32>
      %257 = arith.addf %254, %256 : vector<8x128xf32>
      %c0_52 = arith.constant 0 : index
      %c0_53 = arith.constant 0 : index
      %258 = vector.load %arg6[%c0_52, %c0_53] : memref<8x128xf32, #tpu.memory_space<vmem>>, vector<8x128xf32>
      tpu.vector_store %arg6[%c0_52, %c0_53], %257 {strides = array<i32>} : memref<8x128xf32, #tpu.memory_space<vmem>>, vector<8x128xf32>,
    } else {
    }
    return
  }
  func.func @transform_0(%arg0: i32) -> (i32, i32) {
    %c0_i32 = arith.constant 0 : i32
    %c0_i32_0 = arith.constant 0 : i32
    return %arg0, %c0_i32 : i32, i32
  }
  func.func @transform_1(%arg0: i32) -> (i32, i32) {
    %c0_i32 = arith.constant 0 : i32
    %c0_i32_0 = arith.constant 0 : i32
    %c0_i32_1 = arith.constant 0 : i32
    return %c0_i32, %c0_i32_0 : i32, i32
  }
  func.func @transform_2(%arg0: i32) -> (i32, i32) {
    %c0_i32 = arith.constant 0 : i32
    %c0_i32_0 = arith.constant 0 : i32
    %c0_i32_1 = arith.constant 0 : i32
    return %c0_i32, %c0_i32_0 : i32, i32
  }
  func.func @transform_3(%arg0: i32) -> (i32, i32) {
    %c0_i32 = arith.constant 0 : i32
    %c0_i32_0 = arith.constant 0 : i32
    %c0_i32_1 = arith.constant 0 : i32
    return %c0_i32, %c0_i32_0 : i32, i32
  }
  func.func @transform_4(%arg0: i32) -> (i32, i32) {
    %c0_i32 = arith.constant 0 : i32
    %c0_i32_0 = arith.constant 0 : i32
    %c0_i32_1 = arith.constant 0 : i32
    return %c0_i32, %c0_i32_0 : i32, i32
  }
  func.func @transform_5(%arg0: i32) -> (i32, i32) {
    %c0_i32 = arith.constant 0 : i32
    %c0_i32_0 = arith.constant 0 : i32
    %c0_i32_1 = arith.constant 0 : i32
    return %c0_i32, %c0_i32_0 : i32, i32
  }
}

</mosaic_0001>

<bundles_post_ra>
// kernel: tpu_custom_call.1
= control target key start
LH: loop header
LB: loop body
LE: loop exit
PB: predicated region body
PF: predicated region fallthrough
CT: control target
= control target key end

     0   :  { %10 = vsyncpa [#allocation5], 0  ;;  %s1101_s0 = inlined_call_operand.hbm [shape: f32[64,128], index: 0, kind: input, shape index: {}]   ;;  %s1102_s1 = inlined_call_operand.vmem [shape: s32[8,1], index: 1, kind: input, shape index: {}]   ;;  %s1103_s2 = inlined_call_operand.hbm [shape: f32[32,128], index: 2, kind: input, shape index: {}]   ;;  %s1104_s3 = inlined_call_operand.hbm [shape: f32[32,128], index: 3, kind: input, shape index: {}]   ;;  %s1105_s4 = inlined_call_operand.vmem [shape: f32[1,128], index: 4, kind: input, shape index: {}]   ;;  %s1106_s5 = inlined_call_operand.hbm [shape: f32[8,128], index: 5, kind: output, shape index: {}]  }
   0x1   :  { %11 = vsyncpa [#allocation8], 0 }
   0x2   :  { %12 = vsyncpa [#allocation6], 0  ;;  %s32_s20 = sshll.u32 %s1103_s2, 4  ;;  %s955_s21 = smov [#allocation7]   ;;  %s33_s20 = int_to_ptr.hbm [resolvable:$true] %s32_s20 }
   0x3   :  { %s34_s22 = sshll.u32 %s955_s21, 4  ;;  %s17_s25 = sshll.u32 %s1101_s0, 4  ;;  %s35_s22 = int_to_ptr.vmem [resolvable:$true] %s34_s22  ;;  %s18_s25 = int_to_ptr.hbm [resolvable:$true] %s17_s25 }
   0x4   :  { %s956_s26 = smov 128   ;;  %s957_s27 = smov 8  }
   0x5   :  { %40 = dma.hbm_to_vmem [thread:$0]  %s33_s20, 512, %s35_s22, [#allocation8], %s956_s26, %s956_s26, %s957_s27  }
   0x6   :  { %s958_s28 = smov [#allocation4]   ;;  %s45_s7 = sshll.u32 %s1104_s3, 4  ;;  %s46_s7 = int_to_ptr.hbm [resolvable:$true] %s45_s7 }
   0x7   :  { %s19_s29 = sshll.u32 %s958_s28, 4  ;;  %s959_s2 = smov [#allocation9]   ;;  %s20_s29 = int_to_ptr.vmem [resolvable:$true] %s19_s29 }
   0x8   :  { %25 = dma.hbm_to_vmem [thread:$0]  %s18_s25, 1024, %s20_s29, [#allocation5], %s956_s26, %s956_s26, %s957_s27  }
   0x9   :  { %s47_s8 = sshll.u32 %s959_s2, 4  ;;  %s48_s8 = int_to_ptr.vmem [resolvable:$true] %s47_s8 }
   0xa   :  { %53 = dma.hbm_to_vmem [thread:$0]  %s46_s7, 512, %s48_s8, [#allocation8], %s956_s26, %s956_s26, %s957_s27  }
   0xb   :  { %949 = dma.done.wait [#allocation5], 1024  }
   0xc   :  { %950 = vsyncadd [#allocation5], 4294966272 }
   0xd   :  { %951 = dma.done.wait [#allocation8], 1024  }
   0xe   :  { %952 = vsyncadd [#allocation8], 4294966272  ;;  %vm72_vm0 = vcmask 261120   ;;  %v960_v0 = vmov 0.0   ;;  %v79_v1 = vld [vmem:[#allocation7 + $0x18] sm:$0xff]  ;;  %v78_v2 = vld [vmem:[#allocation7 + $0x10] sm:$0xff] }
   0xf   :  { %73 = vst.msk [vmem:[#allocation2] sm:$0xff] %vm72_vm0, %v960_v0  ;;  %100 = vmatpush.msra.mxu0 %v79_v1  ;;  %181 = vmatpush.msra.mxu1 %v79_v1  ;;  %v77_v3 = vld [vmem:[#allocation7 + $0x8] sm:$0xff]  ;;  %v76_v4 = vld [vmem:[#allocation7] sm:$0xff]  ;;  %s961_s0 = smov 64   ;;  %s962_s3 = smov 32   ;;  %v1016_v14 = vld [vmem:[%s1102_s1] sm:$0xff] }
  0x10   :  { %74 = vst.msk [vmem:[#allocation3] sm:$0xff] %vm72_vm0, %v960_v0  ;;  %256 = vmatpush.msra.mxu2 %v79_v1  ;;  %331 = vmatpush.msra.mxu3 %v79_v1  ;;  %v83_v6 = vld [vmem:[#allocation4] sm:$0xff]  ;;  %v963_v16 = vmov 0   ;;  %vm751_vm1 = vcmp.gt.s32.totalorder %v1016_v14, 0  ;;  %s964_s1 = smov 96   ;;  %v163_v40 = vld [vmem:[#allocation4 + $0x8] sm:$0xff] }
  0x11   :  { %101 = vmatpush.msra.mxu0 %v78_v2  ;;  %182 = vmatpush.msra.mxu1 %v78_v2  ;;  %v152_v17 = vsel %vm751_vm1, 1, %v963_v16  ;;  %vm754_vm7 = vcmp.gt.s32.totalorder %v1016_v14, 1  ;;  %vm757_vm13 = vcmp.gt.s32.totalorder %v1016_v14, 2  ;;  %vm760_vm14 = vcmp.gt.s32.totalorder %v1016_v14, 3  ;;  %s965_s13 = smov [#allocation10]   ;;  %s738_s17 = sshll.u32 %s1106_s5, 4  ;;  %s739_s17 = int_to_ptr.hbm [resolvable:$true] %s738_s17 }
  0x12   :  { %257 = vmatpush.msra.mxu2 %v78_v2  ;;  %332 = vmatpush.msra.mxu3 %v78_v2  ;;  %v230_v44 = vsel %vm754_vm7, 1, %v963_v16  ;;  %s736_s14 = sshll.u32 %s965_s13, 4  ;;  %s737_s14 = int_to_ptr.vmem [resolvable:$true] %s736_s14 }
  0x13   :  { %102 = vmatpush.msra.mxu0 %v77_v3  ;;  %183 = vmatpush.msra.mxu1 %v77_v3 }
  0x14   :  { %258 = vmatpush.msra.mxu2 %v77_v3  ;;  %333 = vmatpush.msra.mxu3 %v77_v3 }
  0x15   :  { %103 = vmatpush.msra.mxu0 %v76_v4  ;;  %184 = vmatpush.msra.mxu1 %v76_v4 }
  0x16   :  { %v1007_v5 = vld [vmem:[#allocation2] sm:$0xff]  ;;  %259 = vmatpush.msra.mxu2 %v76_v4  ;;  %334 = vmatpush.msra.mxu3 %v76_v4 }
  0x17   :  { %749 = vmatmul.msk.f32.vlgmr.msra.gmra.mxu0 %vm72_vm0, %v1007_v5  ;;  %481 = vmatpush.msrb.mxu1 %v79_v1  ;;  %v82_v10 = vld [vmem:[#allocation3] sm:$0xff] }
  0x18   :  { %406 = vmatpush.msrb.mxu0 %v79_v1  ;;  %556 = vmatpush.msrb.mxu2 %v79_v1 }
  0x19   :  { %631 = vmatpush.msrb.mxu3 %v79_v1  ;;  %482 = vmatpush.msrb.mxu1 %v78_v2 }
  0x1a   :  { %407 = vmatpush.msrb.mxu0 %v78_v2  ;;  %557 = vmatpush.msrb.mxu2 %v78_v2 }
  0x1b   :  { %632 = vmatpush.msrb.mxu3 %v78_v2  ;;  %483 = vmatpush.msrb.mxu1 %v77_v3 }
  0x1c   :  { %408 = vmatpush.msrb.mxu0 %v77_v3  ;;  %558 = vmatpush.msrb.mxu2 %v77_v3 }
  0x1d   :  { %633 = vmatpush.msrb.mxu3 %v77_v3  ;;  %484 = vmatpush.msrb.mxu1 %v76_v4 }
  0x1e   :  { %409 = vmatpush.msrb.mxu0 %v76_v4  ;;  %559 = vmatpush.msrb.mxu2 %v76_v4 }
  0x1f   :  { %634 = vmatpush.msrb.mxu3 %v76_v4  ;;  %785 = vset.pattern.permute.xlu2 %v963_v16 }
  0x20   :  { %786 = vset.pattern.permute.xlu1 %v963_v16  ;;  %787 = vset.pattern.permute.xlu0 %v963_v16 }
  0x21   :  { %154 = vperm.xlu2 %785, %v152_v17  }
  0x29   :  { %157 = vrot.lane.b32.xlu2 %v1007_v5, %s964_s1 }
  0x7b   :  { %v155_v34 = vpop.permute.xlu2 %154 }
  0x7c   :  { %vm156_vm6 = vcmp.eq.s32.totalorder %v155_v34, 1 }
  0x83   :  { %v158_v36 = vpop.permute.xlu2 %157 }
  0x94   :  { %v105_v7 = vpop.f32.mrf.mxu0 }
  0x95   :  { %v108_v8 = vadd.f32 %v105_v7, %v83_v6  ;;  %v238_v6 = vld [vmem:[#allocation4 + $0x10] sm:$0xff] }
  0x97   :  { %789 = vtanh.f32 %v108_v8  ;;  %v750_v11 = vmul.f32 -1.442695, %v108_v8 }
  0x99   :  { %791 = vpow2.f32 %v750_v11 }
  0x9d   :  { %v790_v9 = vpop.eup %789 }
  0x9e   :  { %135 = vrot.lane.b32.xlu0 %v790_v9, %s961_s0 }
  0x9f   :  { %v792_v12 = vpop.eup %791 }
  0xa0   :  { %v112_v13 = vadd.f32 1.0, %v792_v12 }
  0xa2   :  { %793 = vrcp.f32 %v112_v13  ;;  %v124_v22 = vand.u32 2147483648, %v112_v13  ;;  %vm118_vm3 = vweird.f32 %v112_v13  ;;  %v122_v23 = vand.u32 2147483647, %v112_v13 }
  0xa4   :  { %v125_v25 = vor.u32 1.1754944e-38, %v124_v22  ;;  %vm123_vm5 = vcmp.eq.f32.partialorder %v122_v23, 8.507059e+37 }
  0xa6   :  { %130 = vrot.lane.b32.xlu0 %v82_v10, %s962_s3 }
  0xa8   :  { %v794_v15 = vpop.eup %793 }
  0xa9   :  { %v114_v18 = vmul.f32 %v794_v15, %v112_v13  ;;  %vm119_vm2 = vweird.f32 %v794_v15  ;;  %v305_v13 = vsel %vm757_vm13, 1, %v963_v16 }
  0xaa   :  { %vm120_vm4 = vmor %vm118_vm3, %vm119_vm2 }
  0xab   :  { %v115_v19 = vsub.f32 1.0, %v114_v18 }
  0xad   :  { %v116_v20 = vmul.f32 %v794_v15, %v115_v19 }
  0xaf   :  { %v117_v21 = vadd.f32 %v794_v15, %v116_v20 }
  0xb1   :  { %v121_v24 = vsel %vm120_vm4, %v794_v15, %v117_v21  ;;  %v380_v15 = vsel %vm760_vm14, 1, %v963_v16 }
  0xb2   :  { %v126_v27 = vsel %vm123_vm5, %v125_v25, %v121_v24 }
 0x110   :  { %v136_v26 = vpop.permute.xlu0 %135 }
 0x111   :  { %v138_v28 = vmul.f32 %v136_v26, %v126_v27 }
 0x113   :  { %140 = vrot.lane.b32.xlu1 %v138_v28, %s962_s3 }
 0x118   :  { %v131_v29 = vpop.permute.xlu0 %130 }
 0x119   :  { %v133_v30 = vmul.f32 %v131_v29, %v126_v27 }
 0x185   :  { %v141_v31 = vpop.permute.xlu1 %140 }
 0x186   :  { %v143_v32 = vadd.f32 %v141_v31, %v133_v30 }
 0x188   :  { %795 = vtanh.f32 %v143_v32  ;;  %v161_v60 = vsel %vm156_vm6, %v143_v32, %v131_v29 }
 0x18e   :  { %v796_v33 = vpop.eup %795 }
 0x18f   :  { %146 = vrot.lane.b32.xlu1 %v796_v33, %s961_s0 }
 0x201   :  { %v147_v35 = vpop.permute.xlu1 %146 }
 0x202   :  { %v149_v37 = vmul.f32 %v147_v35, %v126_v27 }
 0x204   :  { %v160_v38 = vsel %vm156_vm6, %v149_v37, %v158_v36 }
 0x205   :  { %165 = vrot.lane.b32.xlu0 %v160_v38, %s962_s3 }
 0x277   :  { %v166_v39 = vpop.permute.xlu0 %165 }
 0x278   :  { %752 = vmatmul.msk.f32.vlgmr.msra.gmra.mxu1 %vm72_vm0, %v166_v39  ;;  %v313_v39 = vld [vmem:[#allocation4 + $0x18] sm:$0xff] }
 0x2f5   :  { %v186_v41 = vpop.f32.mrf.mxu1 }
 0x2f6   :  { %v189_v42 = vadd.f32 %v186_v41, %v163_v40 }
 0x2f8   :  { %797 = vtanh.f32 %v189_v42  ;;  %v753_v45 = vmul.f32 -1.442695, %v189_v42 }
 0x2fa   :  { %799 = vpow2.f32 %v753_v45 }
 0x2fe   :  { %v798_v43 = vpop.eup %797 }
 0x2ff   :  { %212 = vrot.lane.b32.xlu1 %v798_v43, %s961_s0 }
 0x300   :  { %v800_v46 = vpop.eup %799 }
 0x301   :  { %v193_v47 = vadd.f32 1.0, %v800_v46 }
 0x303   :  { %801 = vrcp.f32 %v193_v47  ;;  %v205_v53 = vand.u32 2147483648, %v193_v47  ;;  %vm199_vm9 = vweird.f32 %v193_v47  ;;  %v203_v54 = vand.u32 2147483647, %v193_v47 }
 0x305   :  { %v206_v56 = vor.u32 1.1754944e-38, %v205_v53  ;;  %vm204_vm11 = vcmp.eq.f32.partialorder %v203_v54, 8.507059e+37 }
 0x307   :  { %232 = vperm.xlu1 %786, %v230_v44  }
 0x309   :  { %v802_v48 = vpop.eup %801 }
 0x30a   :  { %v195_v49 = vmul.f32 %v802_v48, %v193_v47  ;;  %vm200_vm8 = vweird.f32 %v802_v48 }
 0x30b   :  { %vm201_vm10 = vmor %vm199_vm9, %vm200_vm8 }
 0x30c   :  { %v196_v50 = vsub.f32 1.0, %v195_v49 }
 0x30e   :  { %v197_v51 = vmul.f32 %v802_v48, %v196_v50 }
 0x310   :  { %v198_v52 = vadd.f32 %v802_v48, %v197_v51 }
 0x312   :  { %v202_v55 = vsel %vm201_vm10, %v802_v48, %v198_v52  ;;  %vm763_vm10 = vcmp.gt.s32.totalorder %v1016_v14, 4 }
 0x313   :  { %v207_v58 = vsel %vm204_vm11, %v206_v56, %v202_v55 }
 0x314   :  { %v210_v61 = vmul.f32 %v207_v58, %v161_v60 }
 0x371   :  { %v213_v57 = vpop.permute.xlu1 %212 }
 0x372   :  { %v215_v59 = vmul.f32 %v213_v57, %v207_v58 }
 0x374   :  { %217 = vrot.lane.b32.xlu2 %v215_v59, %s962_s3 }
 0x379   :  { %v233_v1 = vpop.permute.xlu1 %232 }
 0x37a   :  { %vm234_vm12 = vcmp.eq.s32.totalorder %v233_v1, 1 }
 0x3ce   :  { %v218_v62 = vpop.permute.xlu2 %217 }
 0x3cf   :  { %v220_v63 = vadd.f32 %v218_v62, %v210_v61 }
 0x3d1   :  { %803 = vtanh.f32 %v220_v63  ;;  %v236_v29 = vsel %vm234_vm12, %v220_v63, %v161_v60 }
 0x3d7   :  { %v804_v0 = vpop.eup %803 }
 0x3d8   :  { %223 = vrot.lane.b32.xlu0 %v804_v0, %s961_s0 }
 0x44a   :  { %v224_v2 = vpop.permute.xlu0 %223 }
 0x44b   :  { %v226_v3 = vmul.f32 %v224_v2, %v207_v58 }
 0x44d   :  { %v235_v4 = vsel %vm234_vm12, %v226_v3, %v160_v38 }
 0x44e   :  { %240 = vrot.lane.b32.xlu2 %v235_v4, %s962_s3 }
 0x4a8   :  { %v241_v5 = vpop.permute.xlu2 %240 }
 0x4a9   :  { %755 = vmatmul.msk.f32.vlgmr.msra.gmra.mxu2 %vm72_vm0, %v241_v5 }
 0x52c   :  { %v261_v7 = vpop.f32.mrf.mxu2 }
 0x52d   :  { %v264_v8 = vadd.f32 %v261_v7, %v238_v6 }
 0x52f   :  { %805 = vtanh.f32 %v264_v8  ;;  %v756_v10 = vmul.f32 -1.442695, %v264_v8  ;;  %v455_v8 = vsel %vm763_vm10, 1, %v963_v16 }
 0x531   :  { %807 = vpow2.f32 %v756_v10 }
 0x535   :  { %v806_v9 = vpop.eup %805 }
 0x536   :  { %287 = vrot.lane.b32.xlu0 %v806_v9, %s961_s0 }
 0x537   :  { %v808_v11 = vpop.eup %807 }
 0x538   :  { %v268_v12 = vadd.f32 1.0, %v808_v11 }
 0x53a   :  { %809 = vrcp.f32 %v268_v12  ;;  %v280_v22 = vand.u32 2147483648, %v268_v12  ;;  %vm274_vm1 = vweird.f32 %v268_v12  ;;  %v278_v23 = vand.u32 2147483647, %v268_v12 }
 0x53c   :  { %v281_v25 = vor.u32 1.1754944e-38, %v280_v22  ;;  %vm279_vm3 = vcmp.eq.f32.partialorder %v278_v23, 8.507059e+37 }
 0x53e   :  { %307 = vperm.xlu0 %787, %v305_v13  }
 0x540   :  { %v810_v17 = vpop.eup %809 }
 0x541   :  { %v270_v18 = vmul.f32 %v810_v17, %v268_v12  ;;  %vm275_vm15 = vweird.f32 %v810_v17 }
 0x542   :  { %vm276_vm2 = vmor %vm274_vm1, %vm275_vm15  ;;  %vm766_vm1 = vcmp.gt.s32.totalorder %v1016_v14, 5 }
 0x543   :  { %v271_v19 = vsub.f32 1.0, %v270_v18 }
 0x545   :  { %v272_v20 = vmul.f32 %v810_v17, %v271_v19 }
 0x546   :  { %382 = vperm.xlu0 %787, %v380_v15  }
 0x547   :  { %v273_v21 = vadd.f32 %v810_v17, %v272_v20 }
 0x549   :  { %v277_v24 = vsel %vm276_vm2, %v810_v17, %v273_v21 }
 0x54a   :  { %v282_v27 = vsel %vm279_vm3, %v281_v25, %v277_v24 }
 0x54b   :  { %v285_v30 = vmul.f32 %v282_v27, %v236_v29 }
 0x5a8   :  { %v288_v26 = vpop.permute.xlu0 %287 }
 0x5a9   :  { %v290_v28 = vmul.f32 %v288_v26, %v282_v27 }
 0x5ab   :  { %292 = vrot.lane.b32.xlu1 %v290_v28, %s962_s3 }
 0x5b0   :  { %v308_v34 = vpop.permute.xlu0 %307 }
 0x5b1   :  { %vm309_vm4 = vcmp.eq.s32.totalorder %v308_v34, 1 }
 0x5b8   :  { %v383_v63 = vpop.permute.xlu0 %382 }
 0x5b9   :  { %vm384_vm9 = vcmp.eq.s32.totalorder %v383_v63, 1 }
 0x61d   :  { %v293_v31 = vpop.permute.xlu1 %292 }
 0x61e   :  { %v295_v32 = vadd.f32 %v293_v31, %v285_v30 }
 0x620   :  { %811 = vtanh.f32 %v295_v32  ;;  %v311_v58 = vsel %vm309_vm4, %v295_v32, %v236_v29 }
 0x626   :  { %v812_v33 = vpop.eup %811 }
 0x627   :  { %298 = vrot.lane.b32.xlu2 %v812_v33, %s961_s0 }
 0x681   :  { %v299_v35 = vpop.permute.xlu2 %298 }
 0x682   :  { %v301_v36 = vmul.f32 %v299_v35, %v282_v27 }
 0x684   :  { %v310_v37 = vsel %vm309_vm4, %v301_v36, %v235_v4  ;;  %v388_v4 = vld [vmem:[#allocation4 + $0x20] sm:$0xff]  ;;  %v463_v36 = vld [vmem:[#allocation4 + $0x28] sm:$0xff] }
 0x685   :  { %315 = vrot.lane.b32.xlu1 %v310_v37, %s962_s3 }
 0x6f7   :  { %v316_v38 = vpop.permute.xlu1 %315 }
 0x6f8   :  { %758 = vmatmul.msk.f32.vlgmr.msra.gmra.mxu3 %vm72_vm0, %v316_v38 }
 0x77b   :  { %v336_v40 = vpop.f32.mrf.mxu3 }
 0x77c   :  { %v339_v41 = vadd.f32 %v336_v40, %v313_v39  ;;  %v530_v40 = vsel %vm766_vm1, 1, %v963_v16 }
 0x77e   :  { %813 = vtanh.f32 %v339_v41  ;;  %v759_v43 = vmul.f32 -1.442695, %v339_v41 }
 0x780   :  { %815 = vpow2.f32 %v759_v43 }
 0x784   :  { %v814_v42 = vpop.eup %813 }
 0x785   :  { %362 = vrot.lane.b32.xlu2 %v814_v42, %s961_s0 }
 0x786   :  { %v816_v44 = vpop.eup %815 }
 0x787   :  { %v343_v45 = vadd.f32 1.0, %v816_v44 }
 0x789   :  { %817 = vrcp.f32 %v343_v45  ;;  %v355_v51 = vand.u32 2147483648, %v343_v45  ;;  %vm349_vm6 = vweird.f32 %v343_v45  ;;  %v353_v52 = vand.u32 2147483647, %v343_v45 }
 0x78b   :  { %v356_v54 = vor.u32 1.1754944e-38, %v355_v51  ;;  %vm354_vm8 = vcmp.eq.f32.partialorder %v353_v52, 8.507059e+37 }
 0x78f   :  { %v818_v46 = vpop.eup %817 }
 0x790   :  { %v345_v47 = vmul.f32 %v818_v46, %v343_v45  ;;  %vm350_vm5 = vweird.f32 %v818_v46 }
 0x791   :  { %vm351_vm7 = vmor %vm349_vm6, %vm350_vm5 }
 0x792   :  { %v346_v48 = vsub.f32 1.0, %v345_v47 }
 0x794   :  { %v347_v49 = vmul.f32 %v818_v46, %v346_v48 }
 0x796   :  { %v348_v50 = vadd.f32 %v818_v46, %v347_v49 }
 0x798   :  { %v352_v53 = vsel %vm351_vm7, %v818_v46, %v348_v50  ;;  %vm769_vm7 = vcmp.gt.s32.totalorder %v1016_v14, 6 }
 0x799   :  { %v357_v56 = vsel %vm354_vm8, %v356_v54, %v352_v53 }
 0x79a   :  { %v360_v59 = vmul.f32 %v357_v56, %v311_v58 }
 0x7df   :  { %v363_v55 = vpop.permute.xlu2 %362 }
 0x7e0   :  { %v365_v57 = vmul.f32 %v363_v55, %v357_v56 }
 0x7e2   :  { %367 = vrot.lane.b32.xlu1 %v365_v57, %s962_s3 }
 0x854   :  { %v368_v60 = vpop.permute.xlu1 %367 }
 0x855   :  { %v370_v61 = vadd.f32 %v368_v60, %v360_v59 }
 0x857   :  { %819 = vtanh.f32 %v370_v61  ;;  %v386_v26 = vsel %vm384_vm9, %v370_v61, %v311_v58 }
 0x85d   :  { %v820_v62 = vpop.eup %819 }
 0x85e   :  { %373 = vrot.lane.b32.xlu2 %v820_v62, %s961_s0 }
 0x8b8   :  { %v374_v0 = vpop.permute.xlu2 %373 }
 0x8b9   :  { %v376_v1 = vmul.f32 %v374_v0, %v357_v56 }
 0x8bb   :  { %v385_v2 = vsel %vm384_vm9, %v376_v1, %v310_v37 }
 0x8bc   :  { %390 = vrot.lane.b32.xlu1 %v385_v2, %s962_s3 }
 0x92e   :  { %v391_v3 = vpop.permute.xlu1 %390 }
 0x92f   :  { %761 = vmatmul.msk.f32.vlgmr.msrb.gmra.mxu0 %vm72_vm0, %v391_v3 }
 0x9ac   :  { %v411_v5 = vpop.f32.mrf.mxu0 }
 0x9ad   :  { %v414_v6 = vadd.f32 %v411_v5, %v388_v4 }
 0x9af   :  { %821 = vtanh.f32 %v414_v6  ;;  %v762_v9 = vmul.f32 -1.442695, %v414_v6  ;;  %v605_v6 = vsel %vm769_vm7, 1, %v963_v16 }
 0x9b1   :  { %823 = vpow2.f32 %v762_v9 }
 0x9b5   :  { %v822_v7 = vpop.eup %821 }
 0x9b6   :  { %437 = vrot.lane.b32.xlu2 %v822_v7, %s961_s0 }
 0x9b7   :  { %v824_v10 = vpop.eup %823 }
 0x9b8   :  { %v418_v11 = vadd.f32 1.0, %v824_v10 }
 0x9ba   :  { %825 = vrcp.f32 %v418_v11  ;;  %v430_v19 = vand.u32 2147483648, %v418_v11  ;;  %vm424_vm12 = vweird.f32 %v418_v11  ;;  %v428_v20 = vand.u32 2147483647, %v418_v11 }
 0x9bc   :  { %v431_v22 = vor.u32 1.1754944e-38, %v430_v19  ;;  %vm429_vm14 = vcmp.eq.f32.partialorder %v428_v20, 8.507059e+37 }
 0x9be   :  { %457 = vperm.xlu2 %785, %v455_v8  }
 0x9c0   :  { %v826_v12 = vpop.eup %825 }
 0x9c1   :  { %v420_v13 = vmul.f32 %v826_v12, %v418_v11  ;;  %vm425_vm11 = vweird.f32 %v826_v12 }
 0x9c2   :  { %vm426_vm13 = vmor %vm424_vm12, %vm425_vm11 }
 0x9c3   :  { %v421_v15 = vsub.f32 1.0, %v420_v13 }
 0x9c5   :  { %v422_v17 = vmul.f32 %v826_v12, %v421_v15 }
 0x9c7   :  { %v423_v18 = vadd.f32 %v826_v12, %v422_v17 }
 0x9c9   :  { %v427_v21 = vsel %vm426_vm13, %v826_v12, %v423_v18  ;;  %vm772_vm13 = vcmp.gt.s32.totalorder %v1016_v14, 7 }
 0x9ca   :  { %v432_v24 = vsel %vm429_vm14, %v431_v22, %v427_v21 }
 0x9cb   :  { %v435_v27 = vmul.f32 %v432_v24, %v386_v26 }
 0xa10   :  { %v438_v23 = vpop.permute.xlu2 %437 }
 0xa11   :  { %v440_v25 = vmul.f32 %v438_v23, %v432_v24 }
 0xa13   :  { %442 = vrot.lane.b32.xlu0 %v440_v25, %s962_s3 }
 0xa18   :  { %v458_v31 = vpop.permute.xlu2 %457 }
 0xa19   :  { %vm459_vm15 = vcmp.eq.s32.totalorder %v458_v31, 1 }
 0xa85   :  { %v443_v28 = vpop.permute.xlu0 %442 }
 0xa86   :  { %v445_v29 = vadd.f32 %v443_v28, %v435_v27 }
 0xa88   :  { %827 = vtanh.f32 %v445_v29  ;;  %v461_v56 = vsel %vm459_vm15, %v445_v29, %v386_v26 }
 0xa8e   :  { %v828_v30 = vpop.eup %827 }
 0xa8f   :  { %448 = vrot.lane.b32.xlu1 %v828_v30, %s961_s0 }
 0xb01   :  { %v449_v32 = vpop.permute.xlu1 %448 }
 0xb02   :  { %v451_v33 = vmul.f32 %v449_v32, %v432_v24 }
 0xb04   :  { %v460_v34 = vsel %vm459_vm15, %v451_v33, %v385_v2  ;;  %v538_v2 = vld [vmem:[#allocation4 + $0x30] sm:$0xff] }
 0xb05   :  { %465 = vrot.lane.b32.xlu0 %v460_v34, %s962_s3 }
 0xb77   :  { %v466_v35 = vpop.permute.xlu0 %465 }
 0xb78   :  { %764 = vmatmul.msk.f32.vlgmr.msrb.gmra.mxu1 %vm72_vm0, %v466_v35 }
 0xbf5   :  { %v486_v37 = vpop.f32.mrf.mxu1 }
 0xbf6   :  { %v489_v38 = vadd.f32 %v486_v37, %v463_v36 }
 0xbf8   :  { %829 = vtanh.f32 %v489_v38  ;;  %v765_v41 = vmul.f32 -1.442695, %v489_v38  ;;  %v680_v38 = vsel %vm772_vm13, 1, %v963_v16 }
 0xbfa   :  { %831 = vpow2.f32 %v765_v41 }
 0xbfe   :  { %v830_v39 = vpop.eup %829 }
 0xbff   :  { %512 = vrot.lane.b32.xlu1 %v830_v39, %s961_s0 }
 0xc00   :  { %v832_v42 = vpop.eup %831 }
 0xc01   :  { %v493_v43 = vadd.f32 1.0, %v832_v42 }
 0xc03   :  { %833 = vrcp.f32 %v493_v43  ;;  %v505_v49 = vand.u32 2147483648, %v493_v43  ;;  %vm499_vm3 = vweird.f32 %v493_v43  ;;  %v503_v50 = vand.u32 2147483647, %v493_v43 }
 0xc05   :  { %v506_v52 = vor.u32 1.1754944e-38, %v505_v49  ;;  %vm504_vm5 = vcmp.eq.f32.partialorder %v503_v50, 8.507059e+37 }
 0xc07   :  { %532 = vperm.xlu1 %786, %v530_v40  }
 0xc09   :  { %v834_v44 = vpop.eup %833 }
 0xc0a   :  { %v495_v45 = vmul.f32 %v834_v44, %v493_v43  ;;  %vm500_vm2 = vweird.f32 %v834_v44 }
 0xc0b   :  { %vm501_vm4 = vmor %vm499_vm3, %vm500_vm2 }
 0xc0c   :  { %v496_v46 = vsub.f32 1.0, %v495_v45 }
 0xc0e   :  { %v497_v47 = vmul.f32 %v834_v44, %v496_v46 }
 0xc10   :  { %v498_v48 = vadd.f32 %v834_v44, %v497_v47 }
 0xc12   :  { %v502_v51 = vsel %vm501_vm4, %v834_v44, %v498_v48 }
 0xc13   :  { %v507_v54 = vsel %vm504_vm5, %v506_v52, %v502_v51 }
 0xc14   :  { %v510_v57 = vmul.f32 %v507_v54, %v461_v56 }
 0xc71   :  { %v513_v53 = vpop.permute.xlu1 %512 }
 0xc72   :  { %v515_v55 = vmul.f32 %v513_v53, %v507_v54 }
 0xc74   :  { %517 = vrot.lane.b32.xlu2 %v515_v55, %s962_s3 }
 0xc79   :  { %v533_v61 = vpop.permute.xlu1 %532 }
 0xc7a   :  { %vm534_vm6 = vcmp.eq.s32.totalorder %v533_v61, 1  ;;  %v701_v61 = vld [vmem:[#allocation9 + $0x8] sm:$0xff] }
 0xcce   :  { %v518_v58 = vpop.permute.xlu2 %517 }
 0xccf   :  { %v520_v59 = vadd.f32 %v518_v58, %v510_v57 }
 0xcd1   :  { %835 = vtanh.f32 %v520_v59  ;;  %v536_v24 = vsel %vm534_vm6, %v520_v59, %v461_v56  ;;  %v703_v59 = vld [vmem:[#allocation9 + $0x18] sm:$0xff] }
 0xcd2   :  { %722 = vmatpush.msra.mxu0 %v703_v59 }
 0xcd7   :  { %v836_v60 = vpop.eup %835 }
 0xcd8   :  { %523 = vrot.lane.b32.xlu0 %v836_v60, %s961_s0  ;;  %v702_v60 = vld [vmem:[#allocation9 + $0x10] sm:$0xff] }
 0xcd9   :  { %723 = vmatpush.msra.mxu0 %v702_v60 }
 0xcdb   :  { %724 = vmatpush.msra.mxu0 %v701_v61 }
 0xd4a   :  { %v524_v62 = vpop.permute.xlu0 %523 }
 0xd4b   :  { %v526_v63 = vmul.f32 %v524_v62, %v507_v54  ;;  %v700_v62 = vld [vmem:[#allocation9] sm:$0xff] }
 0xd4c   :  { %725 = vmatpush.msra.mxu0 %v700_v62 }
 0xd4d   :  { %v535_v0 = vsel %vm534_vm6, %v526_v63, %v460_v34  ;;  %v613_v34 = vld [vmem:[#allocation4 + $0x38] sm:$0xff] }
 0xd4e   :  { %540 = vrot.lane.b32.xlu2 %v535_v0, %s962_s3 }
 0xda8   :  { %v541_v1 = vpop.permute.xlu2 %540 }
 0xda9   :  { %767 = vmatmul.msk.f32.vlgmr.msrb.gmra.mxu2 %vm72_vm0, %v541_v1 }
 0xe2c   :  { %v561_v3 = vpop.f32.mrf.mxu2 }
 0xe2d   :  { %v564_v4 = vadd.f32 %v561_v3, %v538_v2 }
 0xe2f   :  { %837 = vtanh.f32 %v564_v4  ;;  %v768_v7 = vmul.f32 -1.442695, %v564_v4  ;;  %v788_v4 = vld [vmem:[%s1105_s4] ss:$0 sm:$0xff] }
 0xe31   :  { %839 = vpow2.f32 %v768_v7 }
 0xe35   :  { %v838_v5 = vpop.eup %837 }
 0xe36   :  { %587 = vrot.lane.b32.xlu0 %v838_v5, %s961_s0 }
 0xe37   :  { %v840_v8 = vpop.eup %839 }
 0xe38   :  { %v568_v9 = vadd.f32 1.0, %v840_v8 }
 0xe3a   :  { %841 = vrcp.f32 %v568_v9  ;;  %v580_v17 = vand.u32 2147483648, %v568_v9  ;;  %vm574_vm9 = vweird.f32 %v568_v9  ;;  %v578_v18 = vand.u32 2147483647, %v568_v9 }
 0xe3c   :  { %v581_v20 = vor.u32 1.1754944e-38, %v580_v17  ;;  %vm579_vm11 = vcmp.eq.f32.partialorder %v578_v18, 8.507059e+37 }
 0xe3e   :  { %607 = vperm.xlu0 %787, %v605_v6  }
 0xe40   :  { %v842_v10 = vpop.eup %841 }
 0xe41   :  { %v570_v11 = vmul.f32 %v842_v10, %v568_v9  ;;  %vm575_vm8 = vweird.f32 %v842_v10 }
 0xe42   :  { %vm576_vm10 = vmor %vm574_vm9, %vm575_vm8 }
 0xe43   :  { %v571_v12 = vsub.f32 1.0, %v570_v11 }
 0xe45   :  { %v572_v13 = vmul.f32 %v842_v10, %v571_v12 }
 0xe47   :  { %v573_v15 = vadd.f32 %v842_v10, %v572_v13 }
 0xe49   :  { %v577_v19 = vsel %vm576_vm10, %v842_v10, %v573_v15 }
 0xe4a   :  { %v582_v22 = vsel %vm579_vm11, %v581_v20, %v577_v19 }
 0xe4b   :  { %v585_v25 = vmul.f32 %v582_v22, %v536_v24 }
 0xea8   :  { %v588_v21 = vpop.permute.xlu0 %587 }
 0xea9   :  { %v590_v23 = vmul.f32 %v588_v21, %v582_v22 }
 0xeab   :  { %592 = vrot.lane.b32.xlu1 %v590_v23, %s962_s3 }
 0xeb0   :  { %v608_v29 = vpop.permute.xlu0 %607 }
 0xeb1   :  { %vm609_vm12 = vcmp.eq.s32.totalorder %v608_v29, 1 }
 0xf1d   :  { %v593_v26 = vpop.permute.xlu1 %592 }
 0xf1e   :  { %v595_v27 = vadd.f32 %v593_v26, %v585_v25 }
 0xf20   :  { %843 = vtanh.f32 %v595_v27  ;;  %v611_v52 = vsel %vm609_vm12, %v595_v27, %v536_v24 }
 0xf26   :  { %v844_v28 = vpop.eup %843 }
 0xf27   :  { %598 = vrot.lane.b32.xlu2 %v844_v28, %s961_s0 }
 0xf81   :  { %v599_v30 = vpop.permute.xlu2 %598 }
 0xf82   :  { %v601_v31 = vmul.f32 %v599_v30, %v582_v22 }
 0xf84   :  { %v610_v32 = vsel %vm609_vm12, %v601_v31, %v535_v0 }
 0xf85   :  { %615 = vrot.lane.b32.xlu1 %v610_v32, %s962_s3 }
 0xff7   :  { %v616_v33 = vpop.permute.xlu1 %615 }
 0xff8   :  { %770 = vmatmul.msk.f32.vlgmr.msrb.gmra.mxu3 %vm72_vm0, %v616_v33 }
0x107b   :  { %v636_v35 = vpop.f32.mrf.mxu3 }
0x107c   :  { %v639_v36 = vadd.f32 %v636_v35, %v613_v34 }
0x107e   :  { %845 = vtanh.f32 %v639_v36  ;;  %v771_v39 = vmul.f32 -1.442695, %v639_v36 }
0x1080   :  { %847 = vpow2.f32 %v771_v39 }
0x1084   :  { %v846_v37 = vpop.eup %845 }
0x1085   :  { %662 = vrot.lane.b32.xlu2 %v846_v37, %s961_s0 }
0x1086   :  { %v848_v40 = vpop.eup %847 }
0x1087   :  { %v643_v41 = vadd.f32 1.0, %v848_v40 }
0x1089   :  { %849 = vrcp.f32 %v643_v41  ;;  %v655_v47 = vand.u32 2147483648, %v643_v41  ;;  %vm649_vm15 = vweird.f32 %v643_v41  ;;  %v653_v48 = vand.u32 2147483647, %v643_v41 }
0x108b   :  { %v656_v14 = vor.u32 1.1754944e-38, %v655_v47  ;;  %vm654_vm2 = vcmp.eq.f32.partialorder %v653_v48, 8.507059e+37 }
0x108d   :  { %682 = vperm.xlu2 %785, %v680_v38  }
0x108f   :  { %v850_v42 = vpop.eup %849 }
0x1090   :  { %v645_v43 = vmul.f32 %v850_v42, %v643_v41  ;;  %vm650_vm14 = vweird.f32 %v850_v42 }
0x1091   :  { %vm651_vm1 = vmor %vm649_vm15, %vm650_vm14 }
0x1092   :  { %v646_v44 = vsub.f32 1.0, %v645_v43 }
0x1094   :  { %v647_v45 = vmul.f32 %v850_v42, %v646_v44 }
0x1096   :  { %v648_v46 = vadd.f32 %v850_v42, %v647_v45 }
0x1098   :  { %v652_v49 = vsel %vm651_vm1, %v850_v42, %v648_v46 }
0x1099   :  { %v657_v50 = vsel %vm654_vm2, %v656_v14, %v652_v49 }
0x109a   :  { %v660_v53 = vmul.f32 %v657_v50, %v611_v52 }
0x10df   :  { %v663_v16 = vpop.permute.xlu2 %662 }
0x10e0   :  { %v665_v51 = vmul.f32 %v663_v16, %v657_v50 }
0x10e2   :  { %667 = vrot.lane.b32.xlu0 %v665_v51, %s962_s3 }
0x10e7   :  { %v683_v57 = vpop.permute.xlu2 %682 }
0x10e8   :  { %vm684_vm3 = vcmp.eq.s32.totalorder %v683_v57, 1 }
0x1154   :  { %v668_v54 = vpop.permute.xlu0 %667 }
0x1155   :  { %v670_v55 = vadd.f32 %v668_v54, %v660_v53 }
0x1157   :  { %851 = vtanh.f32 %v670_v55  ;;  %v686_v58 = vsel %vm684_vm3, %v670_v55, %v611_v52 }
0x115d   :  { %v852_v56 = vpop.eup %851 }
0x115e   :  { %673 = vrot.lane.b32.xlu1 %v852_v56, %s961_s0 }
0x1166   :  { %693 = vrot.lane.b32.xlu1 %v686_v58, %s964_s1 }
0x11d0   :  { %v674_v63 = vpop.permute.xlu1 %673 }
0x11d1   :  { %v676_v0 = vmul.f32 %v674_v63, %v657_v50 }
0x11d3   :  { %v685_v1 = vsel %vm684_vm3, %v676_v0, %v610_v32 }
0x11d4   :  { %688 = vrot.lane.b32.xlu0 %v685_v1, %s962_s3 }
0x11d8   :  { %v694_v2 = vpop.permute.xlu1 %693 }
0x11d9   :  { %696 = vst.msk [vmem:[#allocation3] sm:$0xff] %vm72_vm0, %v694_v2 }
0x1246   :  { %v689_v3 = vpop.permute.xlu0 %688 }
0x1247   :  { %691 = vst.msk [vmem:[#allocation2] sm:$0xff] %vm72_vm0, %v689_v3  ;;  %773 = vmatmul.msk.f32.vlgmr.msra.gmra.mxu0 %vm72_vm0, %v689_v3 }
0x12c4   :  { %v727_v5 = vpop.f32.mrf.mxu0 }
0x12c5   :  { %v728_v6 = vadd.f32 %v788_v4, %v727_v5 }
0x12c7   :  { %730 = vst [vmem:[#allocation10] sm:$0xff] %v728_v6 }
0x12c8   :  { %741 = dma.vmem_to_hbm [thread:$0]  %s737_s14, 128, %s739_s17, [#allocation6]  }
0x12c9   :  { %953 = dma.done.wait [#allocation6], 128  }
0x12ca   :  { %954 = vsyncadd [#allocation6], 4294967168 }
0x12cb   :  { %746 = vsyncpa [#allocation5], 1 }
0x12cc   :  { %747 = vsyncpa [#allocation8], 1 }
0x12cd   :  { %748 = vsyncpa [#allocation6], 1 }

</bundles_post_ra>
